<compile_context>
chip_gen: v7x
topology: tpu7x:2x2x1
jax: 0.10.0
libtpu: 0.0.40
codegen_flags: <defaults>
</compile_context>

<pallas_src>
import functools

import jax
import jax.numpy as jnp
from jax.experimental import pallas as pl
from jax.experimental.pallas import tpu as pltpu


# ----------------------------------------------------------------------------
# Helpers
# ----------------------------------------------------------------------------
def _round_up(v, m):
    return ((v + m - 1) // m) * m


def _row_tile(M, tm):
    # Clamp the row tile to the (sublane-rounded) problem size so tiny demo
    # shapes do not allocate mostly-padding blocks; large M uses the full tile.
    return min(tm, _round_up(max(M, 8), 8))


# ----------------------------------------------------------------------------
# Pallas kernels
# ----------------------------------------------------------------------------
def _encode_sample_kernel(x_ref, wm_ref, wl_ref, bm_ref, bl_ref, noise_ref,
                          z_ref, mean_ref, logvar_ref, *, mult):
    """Fused: mean/logvar projections + diagonal-Gaussian reparam sample."""
    x = x_ref[...]
    mean = jnp.dot(x, wm_ref[...], preferred_element_type=jnp.float32) + bm_ref[...]
    logvar = jnp.dot(x, wl_ref[...], preferred_element_type=jnp.float32) + bl_ref[...]
    lv = jnp.clip(logvar, -30.0, 20.0)
    std = jnp.exp(0.5 * lv)                      # EUP slot, effectively free
    z = (mean + std * noise_ref[...]) * mult
    z_ref[...] = z.astype(z_ref.dtype)
    mean_ref[...] = mean.astype(mean_ref.dtype)
    logvar_ref[...] = logvar.astype(logvar_ref.dtype)


def encode_sample(x, w_mean, w_logvar, b_mean, b_logvar, noise, mult=1.0, tm=1024):
    """One fused launch: stats = x@W + b, split, sample.  Returns (z, mean, logvar)."""
    M, K = x.shape
    N = w_mean.shape[1]
    tm = _row_tile(M, tm)
    grid = (pl.cdiv(M, tm),)   # ragged last block handled by Pallas (no host pad/slice)
    z, mean, logvar = pl.pallas_call(
        functools.partial(_encode_sample_kernel, mult=mult),
        out_shape=(jax.ShapeDtypeStruct((M, N), jnp.float32),
                   jax.ShapeDtypeStruct((M, N), jnp.float32),
                   jax.ShapeDtypeStruct((M, N), jnp.float32)),
        grid_spec=pltpu.PrefetchScalarGridSpec(
            num_scalar_prefetch=0,
            grid=grid,
            in_specs=[
                pl.BlockSpec((tm, K), lambda i: (i, 0)),
                pl.BlockSpec((K, N), lambda i: (0, 0)),
                pl.BlockSpec((K, N), lambda i: (0, 0)),
                pl.BlockSpec((1, N), lambda i: (0, 0)),
                pl.BlockSpec((1, N), lambda i: (0, 0)),
                pl.BlockSpec((tm, N), lambda i: (i, 0)),
            ],
            out_specs=(
                pl.BlockSpec((tm, N), lambda i: (i, 0)),
                pl.BlockSpec((tm, N), lambda i: (i, 0)),
                pl.BlockSpec((tm, N), lambda i: (i, 0)),
            ),
        ),
        compiler_params=pltpu.CompilerParams(dimension_semantics=("parallel",)),
    )(x, w_mean, w_logvar, b_mean.reshape(1, N), b_logvar.reshape(1, N), noise)
    return z, mean, logvar


def _matmul_bias_kernel(x_ref, w_ref, b_ref, o_ref, *, x_scale):
    x = x_ref[...] * x_scale     # fold the latent 1/0.18215 rescale into the kernel
    o_ref[...] = (jnp.dot(x, w_ref[...], preferred_element_type=jnp.float32)
                  + b_ref[...]).astype(o_ref.dtype)


def matmul_bias(x, w, b, x_scale=1.0, tm=1024):
    """(M, K) @ (K, N) + b (with optional input scale), tiled over rows."""
    M, K = x.shape
    Kw, N = w.shape
    assert K == Kw
    tm = _row_tile(M, tm)
    out = pl.pallas_call(
        functools.partial(_matmul_bias_kernel, x_scale=x_scale),
        out_shape=jax.ShapeDtypeStruct((M, N), jnp.float32),
        grid_spec=pltpu.PrefetchScalarGridSpec(
            num_scalar_prefetch=0,
            grid=(pl.cdiv(M, tm),),
            in_specs=[
                pl.BlockSpec((tm, K), lambda i: (i, 0)),
                pl.BlockSpec((K, N), lambda i: (0, 0)),
                pl.BlockSpec((1, N), lambda i: (0, 0)),
            ],
            out_specs=pl.BlockSpec((tm, N), lambda i: (i, 0)),
        ),
        compiler_params=pltpu.CompilerParams(dimension_semantics=("parallel",)),
    )(x, w, b.reshape(1, N))
    return out


# ----------------------------------------------------------------------------
# Module surrogates (parameters initialised deterministically in-script)
# ----------------------------------------------------------------------------
class DiagonalGaussianDistribution:
    """Holds mean/logvar and the sample already drawn inside the fused kernel."""

    def __init__(self, mean, logvar, sample):
        self.mean = mean
        self.logvar = jnp.clip(logvar, -30.0, 20.0)
        self._sample = sample

    def sample(self):
        return self._sample


class VideoAutoencoderKL:
    """Per-frame 2D VAE surrogate; 8x8 patch encoder/decoder, latent_channels=4."""

    def __init__(self, key, micro_batch_size=4, patch_size=(1, 8, 8)):
        # micro_batch_size kept for API parity; the Pallas path processes all
        # frames in one launch (micro-batching only matters for the real VAE).
        self.micro_batch_size = micro_batch_size
        self.patch_size = patch_size
        self.latent_channels = 4
        self.out_channels = self.latent_channels
        ph, pw = patch_size[1], patch_size[2]
        k_in = 3 * ph * pw  # 192
        k_enc, k_dec = jax.random.split(key)
        enc_w = 0.02 * jax.random.normal(k_enc, (k_in, 2 * self.latent_channels), jnp.float32)
        self.enc_w_mean = enc_w[:, : self.latent_channels]
        self.enc_w_logvar = enc_w[:, self.latent_channels:]
        self.enc_b_mean = jnp.zeros((self.latent_channels,), jnp.float32)
        self.enc_b_logvar = jnp.zeros((self.latent_channels,), jnp.float32)
        self.dec_w = 0.02 * jax.random.normal(k_dec, (self.latent_channels, k_in), jnp.float32)
        self.dec_b = jnp.zeros((k_in,), jnp.float32)

    def _im2col(self, x):  # x: (N, 3, H, W) -> (N*Ho*Wo, 3*ph*pw)
        N, C, H, W = x.shape
        ph, pw = self.patch_size[1], self.patch_size[2]
        Ho, Wo = H // ph, W // pw
        x = x.reshape(N, C, Ho, ph, Wo, pw)
        x = jnp.transpose(x, (0, 2, 4, 1, 3, 5))  # (N, Ho, Wo, C, ph, pw)
        return x.reshape(N * Ho * Wo, C * ph * pw), (N, Ho, Wo)

    def encode(self, x, key):
        # x: (B, C, T, H, W) -> latents (B, 4, T, H/8, W/8) — single fused launch
        B, C, T, H, W = x.shape
        xf = jnp.transpose(x, (0, 2, 1, 3, 4)).reshape(B * T, C, H, W)
        cols, (n, ho, wo) = self._im2col(xf)                      # (B*T*Ho*Wo, 192)
        noise = jax.random.normal(key, (cols.shape[0], self.latent_channels), jnp.float32)
        z, _, _ = encode_sample(cols, self.enc_w_mean, self.enc_w_logvar,
                                self.enc_b_mean, self.enc_b_logvar, noise,
                                mult=0.18215)
        z = z.reshape(n, ho, wo, self.latent_channels)
        z = jnp.transpose(z, (0, 3, 1, 2))                        # (B*T, 4, Ho, Wo)
        z = z.reshape(B, T, self.latent_channels, ho, wo)
        return jnp.transpose(z, (0, 2, 1, 3, 4))                  # B C T H W

    def decode(self, x_z):
        # x_z: (B, 4, T, Ho, Wo) -> (B, 3, T, H, W) — single fused launch
        B, Cl, T, Ho, Wo = x_z.shape
        ph, pw = self.patch_size[1], self.patch_size[2]
        xf = jnp.transpose(x_z, (0, 2, 1, 3, 4)).reshape(B * T, Cl, Ho, Wo)
        rows = jnp.transpose(xf, (0, 2, 3, 1)).reshape(B * T * Ho * Wo, Cl)
        pix = matmul_bias(rows, self.dec_w, self.dec_b, x_scale=1.0 / 0.18215)
        pix = pix.reshape(B * T, Ho, Wo, 3, ph, pw)
        pix = jnp.transpose(pix, (0, 3, 1, 4, 2, 5)).reshape(B * T, 3, Ho * ph, Wo * pw)
        x = pix.reshape(B, T, 3, Ho * ph, Wo * pw)
        return jnp.transpose(x, (0, 2, 1, 3, 4))

    def get_latent_size(self, input_size):
        return [input_size[i] // self.patch_size[i] if input_size[i] is not None else None
                for i in range(3)]


class VAE_Temporal:
    """Causal temporal VAE surrogate: 4x temporal downsample, latent_channels=4."""

    time_downsample_factor = 4

    def __init__(self, key):
        self.latent_channels = 4
        self.out_channels = self.latent_channels
        k_enc, k_dec = jax.random.split(key)
        kin = self.latent_channels * self.time_downsample_factor     # 16
        enc_w = 0.02 * jax.random.normal(k_enc, (kin, 2 * self.latent_channels), jnp.float32)
        self.enc_w_mean = enc_w[:, : self.latent_channels]
        self.enc_w_logvar = enc_w[:, self.latent_channels:]
        self.enc_b_mean = jnp.zeros((self.latent_channels,), jnp.float32)
        self.enc_b_logvar = jnp.zeros((self.latent_channels,), jnp.float32)
        self.dec_w = 0.02 * jax.random.normal(
            k_dec, (self.latent_channels, kin), jnp.float32)
        self.dec_b = jnp.zeros((kin,), jnp.float32)

    def get_latent_size(self, input_size):
        T = input_size[0]
        Tz = None if T is None else (T - 1) // self.time_downsample_factor + 1
        return [Tz, input_size[1], input_size[2]]

    def window_rows(self, x_z):
        """Causal temporal windows of one chunk flattened to matmul rows."""
        B, C, Tc, H, W = x_z.shape
        f = self.time_downsample_factor
        Tz = (Tc - 1) // f + 1
        # causal left-pad with replicated first frame, then non-overlapping windows
        front = jnp.repeat(x_z[:, :, :1], f - 1, axis=2)
        xp = jnp.concatenate([front, x_z], axis=2)                       # (B,C,Tc+f-1,H,W)
        wins = jnp.stack([xp[:, :, j * f: j * f + f] for j in range(Tz)], axis=2)
        rows = jnp.transpose(wins, (0, 2, 4, 5, 1, 3)).reshape(B * Tz * H * W, C * f)
        return rows, (B, self.latent_channels, Tz, H, W)

    @staticmethod
    def reshape_sample(flat, shape):
        B, C, Tz, H, W = shape
        z = flat.reshape(B, Tz, H, W, C)
        return jnp.transpose(z, (0, 4, 1, 2, 3))

    def encode(self, x_z, key):
        """Single-chunk path (used when vae_micro_frame_size is None)."""
        rows, latent_shape = self.window_rows(x_z)
        noise = jax.random.normal(key, (rows.shape[0], self.latent_channels), jnp.float32)
        z_flat, mean, logvar = encode_sample(rows, self.enc_w_mean, self.enc_w_logvar,
                                             self.enc_b_mean, self.enc_b_logvar, noise,
                                             mult=1.0)
        post = DiagonalGaussianDistribution(mean, logvar, z_flat)
        post.latent_shape = latent_shape
        return post

    def decode_rows(self, rows):
        """(M, C) latent rows -> (M, C*f) temporally upsampled rows (one launch)."""
        return matmul_bias(rows, self.dec_w, self.dec_b)


class VideoAutoencoder3D:
    def __init__(self, key, cal_loss=False, vae_micro_frame_size=17, **kwargs):
        if "scale" not in kwargs or "shift" not in kwargs:
            raise Exception("values of scale and shift must be set in data json")
        k_sp, k_tmp = jax.random.split(key)
        self.spatial_vae = VideoAutoencoderKL(k_sp, micro_batch_size=4,
                                              patch_size=kwargs.get("patch_size", (1, 8, 8)))
        self.temporal_vae = VAE_Temporal(k_tmp)
        self.cal_loss = cal_loss
        self.vae_micro_frame_size = vae_micro_frame_size
        if vae_micro_frame_size is None:
            self.micro_z_frame_size = None
        else:
            self.micro_z_frame_size = self.temporal_vae.get_latent_size(
                [vae_micro_frame_size, None, None])[0]
        self.out_channels = self.temporal_vae.out_channels
        scale = jnp.asarray(kwargs["scale"], jnp.float32)
        shift = jnp.asarray(kwargs["shift"], jnp.float32)
        if scale.ndim > 0:
            scale = scale[None, :, None, None, None]
        if shift.ndim > 0:
            shift = shift[None, :, None, None, None]
        self.scale = scale
        self.shift = shift

    def encode(self, x, key):
        k_sp, k_tmp = jax.random.split(key)
        x_z = self.spatial_vae.encode(x, k_sp)                        # (B, 4, T, Ho, Wo)
        tv = self.temporal_vae
        mfs = self.vae_micro_frame_size or x_z.shape[2]
        # Build causal windows for every micro-frame chunk (pure XLA reshapes),
        # then run ONE fused Pallas encode+sample kernel over all rows at once.
        chunk_rows, chunk_shapes = [], []
        for i in range(0, x_z.shape[2], mfs):
            rows, latent_shape = tv.window_rows(x_z[:, :, i:i + mfs])
            chunk_rows.append(rows)
            chunk_shapes.append(latent_shape)
        all_rows = jnp.concatenate(chunk_rows, axis=0)
        noise = jax.random.normal(k_tmp, (all_rows.shape[0], tv.latent_channels), jnp.float32)
        z_flat, mean, logvar = encode_sample(all_rows, tv.enc_w_mean, tv.enc_w_logvar,
                                             tv.enc_b_mean, tv.enc_b_logvar, noise,
                                             mult=1.0)
        z_list, posterior, off = [], None, 0
        for rows, shape in zip(chunk_rows, chunk_shapes):
            m = rows.shape[0]
            z_chunk = z_flat[off:off + m]
            posterior = DiagonalGaussianDistribution(mean[off:off + m],
                                                     logvar[off:off + m], z_chunk)
            z_list.append(VAE_Temporal.reshape_sample(z_chunk, shape))
            off += m
        z = jnp.concatenate(z_list, axis=2)
        if self.cal_loss:
            return z, posterior, x_z
        return (z - self.shift) / self.scale

    def decode(self, z, num_frames=None):
        if not self.cal_loss:
            z = z * self.scale.astype(z.dtype) + self.shift.astype(z.dtype)
        tv = self.temporal_vae
        f = tv.time_downsample_factor
        B, C, Tz_total, H, W = z.shape
        if num_frames is None:
            # TODO(synk): original API crashes on None here; default to full length.
            num_frames = Tz_total * f
        # ONE fused matmul for all latent frames, then per-chunk frame truncation.
        rows = jnp.transpose(z, (0, 2, 3, 4, 1)).reshape(B * Tz_total * H * W, C)
        up = tv.decode_rows(rows)                                     # (rows, C*f)
        up = up.reshape(B, Tz_total, H, W, C, f)
        up = jnp.transpose(up, (0, 4, 1, 5, 2, 3))                    # (B, C, Tz, f, H, W)
        mzs = self.micro_z_frame_size or Tz_total
        mfs = self.vae_micro_frame_size or (Tz_total * f)
        x_z_list, nf = [], num_frames
        for i in range(0, Tz_total, mzs):
            chunk = up[:, :, i:i + mzs]                               # (B, C, tz, f, H, W)
            tz = chunk.shape[2]
            frames = chunk.reshape(B, C, tz * f, H, W)
            keep = min(mfs, nf)
            x_z_list.append(frames[:, :, :keep])
            nf -= mfs
        x_z = jnp.concatenate(x_z_list, axis=2)
        x = self.spatial_vae.decode(x_z)
        if self.cal_loss:
            return x, x_z
        return x

    def forward(self, x, key):
        if not self.cal_loss:
            raise Exception("This method is only available when cal_loss is True")
        z, posterior, x_z = self.encode(x, key)
        x_rec, x_z_rec = self.decode(z, num_frames=x_z.shape[2])
        return x_rec, x_z_rec, z, posterior, x_z

    def get_latent_size(self, input_size):
        if self.vae_micro_frame_size is None or input_size[0] is None:
            return self.temporal_vae.get_latent_size(self.spatial_vae.get_latent_size(input_size))
        sub = [self.vae_micro_frame_size, input_size[1], input_size[2]]
        sub_latent = self.temporal_vae.get_latent_size(self.spatial_vae.get_latent_size(sub))
        sub_latent[0] = sub_latent[0] * (input_size[0] // self.vae_micro_frame_size)
        rem = input_size[0] % self.vae_micro_frame_size
        if rem > 0:
            sub_latent[0] += self.temporal_vae.get_latent_size([rem, None, None])[0]
        return sub_latent


# ----------------------------------------------------------------------------
# Demo
# ----------------------------------------------------------------------------
if __name__ == "__main__":
    key = jax.random.PRNGKey(0)
    k_param, k_data, k_sample = jax.random.split(key, 3)

    B, C, T, H, W = 2, 3, 8, 16, 16
    x = jax.random.normal(k_data, (B, C, T, H, W), jnp.float32)

    model = VideoAutoencoder3D(
        k_param,
        cal_loss=True,
        vae_micro_frame_size=5,
        scale=[0.5, 0.5, 0.5, 0.5],
        shift=[0.0, 0.0, 0.0, 0.0],
    )

    x_rec, x_z_rec, z, posterior, x_z = model.forward(x, k_sample)
    jax.block_until_ready((x_rec, x_z_rec, z, x_z, posterior.mean, posterior.logvar))

    assert x_rec.shape == (B, C, T, H, W)
    assert x_z.shape == (B, 4, T, H // 8, W // 8)
    assert x_z_rec.shape == x_z.shape
    assert z.shape[2] == 3  # (5 -> 2 latent frames) + (3 -> 1 latent frame)
    assert bool(jnp.all(jnp.isfinite(x_rec))) and bool(jnp.all(jnp.isfinite(z)))
    print("KERNEL_OK")
</pallas_src>

<mosaic_0001>
module attributes {stable_mosaic.version = 11 : i64} {
  func.func @_encode_sample_kernel(%arg0: i32, %arg1: memref<64x192xf32, #tpu.memory_space<vmem>>, %arg2: memref<192x4xf32, #tpu.memory_space<vmem>>, %arg3: memref<192x4xf32, #tpu.memory_space<vmem>>, %arg4: memref<1x4xf32, #tpu.memory_space<vmem>>, %arg5: memref<1x4xf32, #tpu.memory_space<vmem>>, %arg6: memref<64x4xf32, #tpu.memory_space<vmem>>, %arg7: memref<64x4xf32, #tpu.memory_space<vmem>>, %arg8: memref<64x4xf32, #tpu.memory_space<vmem>>, %arg9: memref<64x4xf32, #tpu.memory_space<vmem>>) attributes {dimension_semantics = [#tpu.dimension_semantics<parallel>], iteration_bounds = array<i64: 1>, scalar_prefetch = 0 : i64, scratch_operands = 0 : i64, tpu.core_type = #tpu.core_type<tc>, window_params = [{transform_indices = @transform_0, window_bounds = array<i64: 64, 192>}, {pipeline_mode = #tpu.pipeline_mode<synchronous>, transform_indices = @transform_1, window_bounds = array<i64: 192, 4>}, {pipeline_mode = #tpu.pipeline_mode<synchronous>, transform_indices = @transform_2, window_bounds = array<i64: 192, 4>}, {pipeline_mode = #tpu.pipeline_mode<synchronous>, transform_indices = @transform_3, window_bounds = array<i64: 1, 4>}, {pipeline_mode = #tpu.pipeline_mode<synchronous>, transform_indices = @transform_4, window_bounds = array<i64: 1, 4>}, {transform_indices = @transform_5, window_bounds = array<i64: 64, 4>}, {transform_indices = @transform_6, window_bounds = array<i64: 64, 4>}, {transform_indices = @transform_7, window_bounds = array<i64: 64, 4>}, {transform_indices = @transform_8, window_bounds = array<i64: 64, 4>}]} {
    %c0 = arith.constant 0 : index
    %c0_0 = arith.constant 0 : index
    %0 = vector.load %arg1[%c0, %c0_0] : memref<64x192xf32, #tpu.memory_space<vmem>>, vector<64x192xf32>
    %c0_1 = arith.constant 0 : index
    %c0_2 = arith.constant 0 : index
    %1 = vector.load %arg2[%c0_1, %c0_2] : memref<192x4xf32, #tpu.memory_space<vmem>>, vector<192x4xf32>
    %cst = arith.constant dense<0.000000e+00> : vector<64x4xf32>
    %2 = tpu.matmul %0, %1, %cst {dimension_numbers = #tpu.dot_dimension_numbers<[1], [0], [0], [1], [0, 0, 1, 1], [], []>} : vector<64x192xf32>, vector<192x4xf32>, vector<64x4xf32> -> vector<64x4xf32>
    %c0_3 = arith.constant 0 : index
    %c0_4 = arith.constant 0 : index
    %3 = vector.load %arg4[%c0_3, %c0_4] : memref<1x4xf32, #tpu.memory_space<vmem>>, vector<1x4xf32>
    %4 = vector.broadcast %3 : vector<1x4xf32> to vector<64x4xf32>
    %5 = arith.addf %2, %4 : vector<64x4xf32>
    %c0_5 = arith.constant 0 : index
    %c0_6 = arith.constant 0 : index
    %6 = vector.load %arg3[%c0_5, %c0_6] : memref<192x4xf32, #tpu.memory_space<vmem>>, vector<192x4xf32>
    %cst_7 = arith.constant dense<0.000000e+00> : vector<64x4xf32>
    %7 = tpu.matmul %0, %6, %cst_7 {dimension_numbers = #tpu.dot_dimension_numbers<[1], [0], [0], [1], [0, 0, 1, 1], [], []>} : vector<64x192xf32>, vector<192x4xf32>, vector<64x4xf32> -> vector<64x4xf32>
    %c0_8 = arith.constant 0 : index
    %c0_9 = arith.constant 0 : index
    %8 = vector.load %arg5[%c0_8, %c0_9] : memref<1x4xf32, #tpu.memory_space<vmem>>, vector<1x4xf32>
    %9 = vector.broadcast %8 : vector<1x4xf32> to vector<64x4xf32>
    %10 = arith.addf %7, %9 : vector<64x4xf32>
    %cst_10 = arith.constant -3.000000e+01 : f32
    %cst_11 = arith.constant 2.000000e+01 : f32
    %11 = vector.broadcast %cst_10 : f32 to vector<64x4xf32>
    %12 = arith.maximumf %11, %10 : vector<64x4xf32>
    %13 = vector.broadcast %cst_11 : f32 to vector<64x4xf32>
    %14 = arith.minimumf %13, %12 : vector<64x4xf32>
    %cst_12 = arith.constant 5.000000e-01 : f32
    %15 = vector.broadcast %cst_12 : f32 to vector<64x4xf32>
    %16 = arith.mulf %15, %14 : vector<64x4xf32>
    %17 = math.exp %16 : vector<64x4xf32>
    %c0_13 = arith.constant 0 : index
    %c0_14 = arith.constant 0 : index
    %18 = vector.load %arg6[%c0_13, %c0_14] : memref<64x4xf32, #tpu.memory_space<vmem>>, vector<64x4xf32>
    %19 = arith.mulf %17, %18 : vector<64x4xf32>
    %20 = arith.addf %5, %19 : vector<64x4xf32>
    %cst_15 = arith.constant 1.821500e-01 : f32
    %21 = vector.broadcast %cst_15 : f32 to vector<64x4xf32>
    %22 = arith.mulf %20, %21 : vector<64x4xf32>
    %c0_16 = arith.constant 0 : index
    %c0_17 = arith.constant 0 : index
    %23 = vector.load %arg7[%c0_16, %c0_17] : memref<64x4xf32, #tpu.memory_space<vmem>>, vector<64x4xf32>
    tpu.vector_store %arg7[%c0_16, %c0_17], %22 {strides = array<i32>} : memref<64x4xf32, #tpu.memory_space<vmem>>, vector<64x4xf32>,
    %c0_18 = arith.constant 0 : index
    %c0_19 = arith.constant 0 : index
    %24 = vector.load %arg8[%c0_18, %c0_19] : memref<64x4xf32, #tpu.memory_space<vmem>>, vector<64x4xf32>
    tpu.vector_store %arg8[%c0_18, %c0_19], %5 {strides = array<i32>} : memref<64x4xf32, #tpu.memory_space<vmem>>, vector<64x4xf32>,
    %c0_20 = arith.constant 0 : index
    %c0_21 = arith.constant 0 : index
    %25 = vector.load %arg9[%c0_20, %c0_21] : memref<64x4xf32, #tpu.memory_space<vmem>>, vector<64x4xf32>
    tpu.vector_store %arg9[%c0_20, %c0_21], %10 {strides = array<i32>} : memref<64x4xf32, #tpu.memory_space<vmem>>, vector<64x4xf32>,
    return
  }
  func.func @transform_0(%arg0: i32) -> (i32, i32) {
    %c0_i32 = arith.constant 0 : i32
    %c0_i32_0 = arith.constant 0 : i32
    return %arg0, %c0_i32 : i32, i32
  }
  func.func @transform_1(%arg0: i32) -> (i32, i32) {
    %c0_i32 = arith.constant 0 : i32
    %c0_i32_0 = arith.constant 0 : i32
    %c0_i32_1 = arith.constant 0 : i32
    return %c0_i32, %c0_i32_0 : i32, i32
  }
  func.func @transform_2(%arg0: i32) -> (i32, i32) {
    %c0_i32 = arith.constant 0 : i32
    %c0_i32_0 = arith.constant 0 : i32
    %c0_i32_1 = arith.constant 0 : i32
    return %c0_i32, %c0_i32_0 : i32, i32
  }
  func.func @transform_3(%arg0: i32) -> (i32, i32) {
    %c0_i32 = arith.constant 0 : i32
    %c0_i32_0 = arith.constant 0 : i32
    %c0_i32_1 = arith.constant 0 : i32
    return %c0_i32, %c0_i32_0 : i32, i32
  }
  func.func @transform_4(%arg0: i32) -> (i32, i32) {
    %c0_i32 = arith.constant 0 : i32
    %c0_i32_0 = arith.constant 0 : i32
    %c0_i32_1 = arith.constant 0 : i32
    return %c0_i32, %c0_i32_0 : i32, i32
  }
  func.func @transform_5(%arg0: i32) -> (i32, i32) {
    %c0_i32 = arith.constant 0 : i32
    %c0_i32_0 = arith.constant 0 : i32
    return %arg0, %c0_i32 : i32, i32
  }
  func.func @transform_6(%arg0: i32) -> (i32, i32) {
    %c0_i32 = arith.constant 0 : i32
    %c0_i32_0 = arith.constant 0 : i32
    return %arg0, %c0_i32 : i32, i32
  }
  func.func @transform_7(%arg0: i32) -> (i32, i32) {
    %c0_i32 = arith.constant 0 : i32
    %c0_i32_0 = arith.constant 0 : i32
    return %arg0, %c0_i32 : i32, i32
  }
  func.func @transform_8(%arg0: i32) -> (i32, i32) {
    %c0_i32 = arith.constant 0 : i32
    %c0_i32_0 = arith.constant 0 : i32
    return %arg0, %c0_i32 : i32, i32
  }
}

</mosaic_0001>

<bundles_post_ra>
// kernel: tpu_custom_call.1
= control target key start
LH: loop header
LB: loop body
LE: loop exit
PB: predicated region body
PF: predicated region fallthrough
CT: control target
= control target key end

     0   :  { %v555_v0 = vmov 0.0|0.0   ;;  %vm73_vm0 = vcmask 523264   ;;  %vm411_vm1 = vcmask 31744   ;;  %s1003_s2 = inlined_call_operand.vmem [shape: f32[192,4], index: 2, kind: input, shape index: {}]   ;;  %s1004_s1 = inlined_call_operand.vmem [shape: f32[192,4], index: 1, kind: input, shape index: {}]   ;;  %s1005_s0 = inlined_call_operand.vmem [shape: f32[64,192], index: 0, kind: input, shape index: {}]   ;;  %s1006_s4 = inlined_call_operand.vmem [shape: f32[1,4], index: 4, kind: input, shape index: {}]   ;;  %s1007_s3 = inlined_call_operand.vmem [shape: f32[1,4], index: 3, kind: input, shape index: {}]   ;;  %s1008_s8 = inlined_call_operand.vmem [shape: f32[64,4], index: 8, kind: output, shape index: {2}]   ;;  %s1009_s7 = inlined_call_operand.vmem [shape: f32[64,4], index: 7, kind: output, shape index: {1}]   ;;  %s1010_s5 = inlined_call_operand.vmem [shape: f32[64,4], index: 5, kind: input, shape index: {}]   ;;  %s1011_s6 = inlined_call_operand.vmem [shape: f32[64,4], index: 6, kind: output, shape index: {0}]  }
   0x1   :  { %502 = vmatprep.subr.bf16.mxu1 %v555_v0  ;;  %v203_v1 = vld [vmem:[%s1003_s2] sm:$0xff]  ;;  %v204_v2 = vld [vmem:[%s1003_s2 + $0x8] sm:$0xff]  ;;  %v205_v3 = vld [vmem:[%s1003_s2 + $0x10] sm:$0xff]  ;;  %466 = vmatprep.subr.bf16.mxu0 %v555_v0 }
   0x2   :  { %v503_v4 = vpack.c.bf16 %v204_v2, %v203_v1  ;;  %v206_v5 = vld [vmem:[%s1003_s2 + $0x18] sm:$0xff]  ;;  %v42_v7 = vld [vmem:[%s1004_s1] sm:$0xff]  ;;  %v43_v8 = vld [vmem:[%s1004_s1 + $0x8] sm:$0xff] }
   0x3   :  { %v506_v6 = vpack.c.bf16 %v206_v5, %v205_v3  ;;  %v207_v9 = vld [vmem:[%s1003_s2 + $0x20] sm:$0xff]  ;;  %v208_v10 = vld [vmem:[%s1003_s2 + $0x28] sm:$0xff]  ;;  %v467_v11 = vpack.c.bf16 %v43_v8, %v42_v7  ;;  %v44_v12 = vld [vmem:[%s1004_s1 + $0x10] sm:$0xff] }
   0x4   :  { %504 = vmatpush1.bf16.msra.mxu1 %v503_v4  ;;  %v45_v13 = vld [vmem:[%s1004_s1 + $0x18] sm:$0xff]  ;;  %v509_v15 = vpack.c.bf16 %v208_v10, %v207_v9  ;;  %v46_v16 = vld [vmem:[%s1004_s1 + $0x20] sm:$0xff]  ;;  %v47_v17 = vld [vmem:[%s1004_s1 + $0x28] sm:$0xff] }
   0x5   :  { %505 = vmatprep.subr.bf16.mxu1 %v555_v0  ;;  %468 = vmatpush1.bf16.msra.mxu0 %v467_v11  ;;  %v470_v14 = vpack.c.bf16 %v45_v13, %v44_v12  ;;  %v209_v18 = vld [vmem:[%s1003_s2 + $0x30] sm:$0xff]  ;;  %v210_v19 = vld [vmem:[%s1003_s2 + $0x38] sm:$0xff]  ;;  %v473_v20 = vpack.c.bf16 %v47_v17, %v46_v16  ;;  %v211_v24 = vld [vmem:[%s1003_s2 + $0x40] sm:$0xff] }
   0x6   :  { %469 = vmatprep.subr.bf16.mxu0 %v555_v0  ;;  %v512_v21 = vpack.c.bf16 %v210_v19, %v209_v18  ;;  %v48_v22 = vld [vmem:[%s1004_s1 + $0x30] sm:$0xff]  ;;  %v49_v23 = vld [vmem:[%s1004_s1 + $0x38] sm:$0xff]  ;;  %v212_v25 = vld [vmem:[%s1003_s2 + $0x48] sm:$0xff] }
   0x7   :  { %v27_v26 = vld [vmem:[%s1005_s0 + $0x8] sm:$0xff]  ;;  %v476_v27 = vpack.c.bf16 %v49_v23, %v48_v22  ;;  %v515_v28 = vpack.c.bf16 %v212_v25, %v211_v24  ;;  %v50_v29 = vld [vmem:[%s1004_s1 + $0x40] sm:$0xff]  ;;  %v213_v31 = vld [vmem:[%s1003_s2 + $0x50] sm:$0xff] }
   0x8   :  { %507 = vmatpush1.bf16.msra.mxu1 %v506_v6  ;;  %458 = vmatprep.mubr.msk.f32.mxu1 %vm73_vm0, %v27_v26  ;;  %v51_v30 = vld [vmem:[%s1004_s1 + $0x48] sm:$0xff]  ;;  %v214_v32 = vld [vmem:[%s1003_s2 + $0x58] sm:$0xff]  ;;  %v52_v35 = vld [vmem:[%s1004_s1 + $0x50] sm:$0xff] }
   0x9   :  { %508 = vmatprep.subr.bf16.mxu1 %v555_v0  ;;  %471 = vmatpush1.bf16.msra.mxu0 %v470_v14  ;;  %v479_v33 = vpack.c.bf16 %v51_v30, %v50_v29  ;;  %v518_v34 = vpack.c.bf16 %v214_v32, %v213_v31  ;;  %v53_v36 = vld [vmem:[%s1004_s1 + $0x58] sm:$0xff]  ;;  %v215_v37 = vld [vmem:[%s1003_s2 + $0x60] sm:$0xff]  ;;  %v216_v38 = vld [vmem:[%s1003_s2 + $0x68] sm:$0xff] }
   0xa   :  { %472 = vmatprep.subr.bf16.mxu0 %v555_v0  ;;  %449 = vmatprep.mubr.msk.f32.mxu0 %vm73_vm0, %v27_v26  ;;  %v482_v39 = vpack.c.bf16 %v53_v36, %v52_v35  ;;  %v521_v40 = vpack.c.bf16 %v216_v38, %v215_v37  ;;  %v54_v41 = vld [vmem:[%s1004_s1 + $0x60] sm:$0xff]  ;;  %v55_v42 = vld [vmem:[%s1004_s1 + $0x68] sm:$0xff]  ;;  %v217_v43 = vld [vmem:[%s1003_s2 + $0x70] sm:$0xff] }
   0xb   :  { %v218_v44 = vld [vmem:[%s1003_s2 + $0x78] sm:$0xff]  ;;  %v485_v45 = vpack.c.bf16 %v55_v42, %v54_v41  ;;  %v56_v47 = vld [vmem:[%s1004_s1 + $0x70] sm:$0xff]  ;;  %v219_v49 = vld [vmem:[%s1003_s2 + $0x80] sm:$0xff] }
   0xc   :  { %510 = vmatpush1.bf16.msra.mxu1 %v509_v15  ;;  %v524_v46 = vpack.c.bf16 %v218_v44, %v217_v43  ;;  %v57_v48 = vld [vmem:[%s1004_s1 + $0x78] sm:$0xff]  ;;  %v220_v50 = vld [vmem:[%s1003_s2 + $0x88] sm:$0xff]  ;;  %v58_v53 = vld [vmem:[%s1004_s1 + $0x80] sm:$0xff] }
   0xd   :  { %511 = vmatprep.subr.bf16.mxu1 %v555_v0  ;;  %474 = vmatpush1.bf16.msra.mxu0 %v473_v20  ;;  %v488_v51 = vpack.c.bf16 %v57_v48, %v56_v47  ;;  %v527_v52 = vpack.c.bf16 %v220_v50, %v219_v49  ;;  %v59_v54 = vld [vmem:[%s1004_s1 + $0x88] sm:$0xff]  ;;  %v221_v55 = vld [vmem:[%s1003_s2 + $0x90] sm:$0xff]  ;;  %v222_v56 = vld [vmem:[%s1003_s2 + $0x98] sm:$0xff] }
   0xe   :  { %475 = vmatprep.subr.bf16.mxu0 %v555_v0  ;;  %v491_v57 = vpack.c.bf16 %v59_v54, %v58_v53  ;;  %v530_v58 = vpack.c.bf16 %v222_v56, %v221_v55  ;;  %v60_v59 = vld [vmem:[%s1004_s1 + $0x90] sm:$0xff]  ;;  %v61_v60 = vld [vmem:[%s1004_s1 + $0x98] sm:$0xff]  ;;  %v223_v61 = vld [vmem:[%s1003_s2 + $0xa0] sm:$0xff] }
   0xf   :  { %v224_v62 = vld [vmem:[%s1003_s2 + $0xa8] sm:$0xff]  ;;  %v494_v63 = vpack.c.bf16 %v61_v60, %v60_v59  ;;  %v62_v2 = vld [vmem:[%s1004_s1 + $0xa0] sm:$0xff]  ;;  %v225_v4 = vld [vmem:[%s1003_s2 + $0xb0] sm:$0xff] }
  0x10   :  { %513 = vmatpush1.bf16.msra.mxu1 %v512_v21  ;;  %v533_v1 = vpack.c.bf16 %v224_v62, %v223_v61  ;;  %v63_v3 = vld [vmem:[%s1004_s1 + $0xa8] sm:$0xff]  ;;  %v226_v5 = vld [vmem:[%s1003_s2 + $0xb8] sm:$0xff]  ;;  %v64_v8 = vld [vmem:[%s1004_s1 + $0xb0] sm:$0xff] }
  0x11   :  { %514 = vmatprep.subr.bf16.mxu1 %v555_v0  ;;  %477 = vmatpush1.bf16.msra.mxu0 %v476_v27  ;;  %v497_v6 = vpack.c.bf16 %v63_v3, %v62_v2  ;;  %v536_v7 = vpack.c.bf16 %v226_v5, %v225_v4  ;;  %v65_v9 = vld [vmem:[%s1004_s1 + $0xb8] sm:$0xff]  ;;  %v26_v11 = vld [vmem:[%s1005_s0] sm:$0xff]  ;;  %v28_v13 = vld [vmem:[%s1005_s0 + $0x10] sm:$0xff] }
  0x12   :  { %478 = vmatprep.subr.bf16.mxu0 %v555_v0  ;;  %v500_v10 = vpack.c.bf16 %v65_v9, %v64_v8  ;;  %v29_v12 = vld [vmem:[%s1005_s0 + $0x18] sm:$0xff]  ;;  %v31_v14 = vld [vmem:[%s1005_s0 + $0x28] sm:$0xff]  ;;  %v32_v16 = vld [vmem:[%s1005_s0 + $0x30] sm:$0xff] }
  0x13   :  { %v33_v15 = vld [vmem:[%s1005_s0 + $0x38] sm:$0xff]  ;;  %v35_v17 = vld [vmem:[%s1005_s0 + $0x48] sm:$0xff]  ;;  %v34_v18 = vld [vmem:[%s1005_s0 + $0x40] sm:$0xff] }
  0x14   :  { %516 = vmatpush1.bf16.msra.mxu1 %v515_v28  ;;  %v37_v19 = vld [vmem:[%s1005_s0 + $0x58] sm:$0xff]  ;;  %v36_v20 = vld [vmem:[%s1005_s0 + $0x50] sm:$0xff]  ;;  %v39_v21 = vld [vmem:[%s1005_s0 + $0x68] sm:$0xff] }
  0x15   :  { %517 = vmatprep.subr.bf16.mxu1 %v555_v0  ;;  %480 = vmatpush1.bf16.msra.mxu0 %v479_v33  ;;  %v38_v22 = vld [vmem:[%s1005_s0 + $0x60] sm:$0xff]  ;;  %v41_v23 = vld [vmem:[%s1005_s0 + $0x78] sm:$0xff]  ;;  %v40_v24 = vld [vmem:[%s1005_s0 + $0x70] sm:$0xff] }
  0x16   :  { %481 = vmatprep.subr.bf16.mxu0 %v555_v0  ;;  %v836_v25 = vld [vmem:[%s1006_s4] ss:$0 sm:$0xff] }
  0x17   :  { %v842_v29 = vld [vmem:[%s1007_s3] ss:$0 sm:$0xff] }
  0x18   :  { %519 = vmatpush1.bf16.msra.mxu1 %v518_v34 }
  0x19   :  { %520 = vmatprep.subr.bf16.mxu1 %v555_v0  ;;  %483 = vmatpush1.bf16.msra.mxu0 %v482_v39 }
  0x1a   :  { %484 = vmatprep.subr.bf16.mxu0 %v555_v0 }
  0x1c   :  { %522 = vmatpush1.bf16.msra.mxu1 %v521_v40 }
  0x1d   :  { %523 = vmatprep.subr.bf16.mxu1 %v555_v0  ;;  %486 = vmatpush1.bf16.msra.mxu0 %v485_v45 }
  0x1e   :  { %487 = vmatprep.subr.bf16.mxu0 %v555_v0 }
  0x20   :  { %525 = vmatpush1.bf16.msra.mxu1 %v524_v46 }
  0x21   :  { %526 = vmatprep.subr.bf16.mxu1 %v555_v0  ;;  %489 = vmatpush1.bf16.msra.mxu0 %v488_v51 }
  0x22   :  { %490 = vmatprep.subr.bf16.mxu0 %v555_v0 }
  0x24   :  { %528 = vmatpush1.bf16.msra.mxu1 %v527_v52 }
  0x25   :  { %529 = vmatprep.subr.bf16.mxu1 %v555_v0  ;;  %492 = vmatpush1.bf16.msra.mxu0 %v491_v57 }
  0x26   :  { %493 = vmatprep.subr.bf16.mxu0 %v555_v0 }
  0x28   :  { %531 = vmatpush1.bf16.msra.mxu1 %v530_v58 }
  0x29   :  { %532 = vmatprep.subr.bf16.mxu1 %v555_v0  ;;  %495 = vmatpush1.bf16.msra.mxu0 %v494_v63 }
  0x2a   :  { %496 = vmatprep.subr.bf16.mxu0 %v555_v0 }
  0x2c   :  { %534 = vmatpush1.bf16.msra.mxu1 %v533_v1 }
  0x2d   :  { %535 = vmatprep.subr.bf16.mxu1 %v555_v0  ;;  %498 = vmatpush1.bf16.msra.mxu0 %v497_v6 }
  0x2e   :  { %499 = vmatprep.subr.bf16.mxu0 %v555_v0  ;;  %v30_v0 = vld [vmem:[%s1005_s0 + $0x20] sm:$0xff] }
  0x30   :  { %537 = vmatpush1.bf16.msra.mxu1 %v536_v7  ;;  %v379_v7 = vld [vmem:[%s1010_s5] sm:$0xff] }
  0x31   :  { %501 = vmatpush1.bf16.msra.mxu0 %v500_v10 }
  0x33   :  { %299 = vmatmul.mubr.f32.vlgmr.msra.gmra.mrb[0].mxu1 %v26_v11 }
  0x34   :  { %459 = vmatprep.mubr.msk.f32.mxu1 %vm73_vm0, %v29_v12  ;;  %163 = vmatmul.mubr.f32.vlgmr.msra.gmra.mrb[0].mxu0 %v26_v11 }
  0x35   :  { %450 = vmatprep.mubr.msk.f32.mxu0 %vm73_vm0, %v29_v12 }
  0x37   :  { %304 = vmatmul.mubr.f32.gmra.mrb[2].mxu1 %v28_v13 }
  0x38   :  { %460 = vmatprep.mubr.msk.f32.mxu1 %vm73_vm0, %v31_v14  ;;  %168 = vmatmul.mubr.f32.gmra.mrb[2].mxu0 %v28_v13 }
  0x39   :  { %451 = vmatprep.mubr.msk.f32.mxu0 %vm73_vm0, %v31_v14 }
  0x3b   :  { %309 = vmatmul.mubr.f32.gmra.mrb[4].mxu1 %v30_v0 }
  0x3c   :  { %461 = vmatprep.mubr.msk.f32.mxu1 %vm73_vm0, %v33_v15  ;;  %173 = vmatmul.mubr.f32.gmra.mrb[4].mxu0 %v30_v0 }
  0x3d   :  { %452 = vmatprep.mubr.msk.f32.mxu0 %vm73_vm0, %v33_v15 }
  0x3f   :  { %314 = vmatmul.mubr.f32.gmra.mrb[6].mxu1 %v32_v16 }
  0x40   :  { %462 = vmatprep.mubr.msk.f32.mxu1 %vm73_vm0, %v35_v17  ;;  %178 = vmatmul.mubr.f32.gmra.mrb[6].mxu0 %v32_v16 }
  0x41   :  { %453 = vmatprep.mubr.msk.f32.mxu0 %vm73_vm0, %v35_v17 }
  0x43   :  { %319 = vmatmul.mubr.f32.gmra.mrb[8].mxu1 %v34_v18 }
  0x44   :  { %463 = vmatprep.mubr.msk.f32.mxu1 %vm73_vm0, %v37_v19  ;;  %183 = vmatmul.mubr.f32.gmra.mrb[8].mxu0 %v34_v18 }
  0x45   :  { %454 = vmatprep.mubr.msk.f32.mxu0 %vm73_vm0, %v37_v19  ;;  %v380_v19 = vld [vmem:[%s1010_s5 + $0x8] sm:$0xff] }
  0x47   :  { %324 = vmatmul.mubr.f32.gmra.mrb[10].mxu1 %v36_v20 }
  0x48   :  { %464 = vmatprep.mubr.msk.f32.mxu1 %vm73_vm0, %v39_v21  ;;  %188 = vmatmul.mubr.f32.gmra.mrb[10].mxu0 %v36_v20 }
  0x49   :  { %455 = vmatprep.mubr.msk.f32.mxu0 %vm73_vm0, %v39_v21 }
  0x4b   :  { %329 = vmatmul.mubr.f32.gmra.mrb[12].mxu1 %v38_v22 }
  0x4c   :  { %465 = vmatprep.mubr.msk.f32.mxu1 %vm73_vm0, %v41_v23  ;;  %193 = vmatmul.mubr.f32.gmra.mrb[12].mxu0 %v38_v22 }
  0x4d   :  { %456 = vmatprep.mubr.msk.f32.mxu0 %vm73_vm0, %v41_v23 }
  0x4f   :  { %334 = vmatmul.mubr.f32.gmra.mrb[14].mxu1 %v40_v24 }
  0x50   :  { %198 = vmatmul.mubr.f32.gmra.mrb[14].mxu0 %v40_v24 }
 0x106   :  { %v300_v26 = vpop.f32.mrb[0].mxu1 }
 0x107   :  { %v301_v27 = vadd.f32 %v836_v25, %v300_v26  ;;  %v302_v28 = vpop.f32.mrb[1].mxu1  ;;  %v164_v31 = vpop.f32.mrb[0].mxu0 }
 0x108   :  { %v849_v33 = vadd.f32 %v842_v29, %v164_v31  ;;  %v166_v34 = vpop.f32.mrb[1].mxu0 }
 0x109   :  { %v339_v30 = vmax.f32 %v301_v27, -30.0  ;;  %428 = vst.msk [vmem:[%s1008_s8] sm:$0xff] %vm411_vm1, %v301_v27 }
 0x10a   :  { %v305_v32 = vpop.f32.mrb[2].mxu1  ;;  %420 = vst.msk [vmem:[%s1009_s7] sm:$0xff] %vm411_vm1, %v849_v33 }
 0x10b   :  { %v347_v35 = vmin.f32 %v339_v30, 20.0  ;;  %v306_v36 = vadd.f32 %v836_v25, %v305_v32  ;;  %v307_v37 = vpop.f32.mrb[3].mxu1  ;;  %v169_v40 = vpop.f32.mrb[2].mxu0 }
 0x10c   :  { %v862_v42 = vadd.f32 %v842_v29, %v169_v40  ;;  %v171_v43 = vpop.f32.mrb[3].mxu0 }
 0x10d   :  { %v355_v38 = vmul.f32 0.5, %v347_v35  ;;  %v340_v39 = vmax.f32 %v306_v36, -30.0  ;;  %429 = vst.msk [vmem:[%s1008_s8 + $0x8] sm:$0xff] %vm411_vm1, %v306_v36  ;;  %v381_v36 = vld [vmem:[%s1010_s5 + $0x10] sm:$0xff] }
 0x10e   :  { %v310_v41 = vpop.f32.mrb[4].mxu1  ;;  %421 = vst.msk [vmem:[%s1009_s7 + $0x8] sm:$0xff] %vm411_vm1, %v862_v42 }
 0x10f   :  { %v363_v44 = vmul.f32 1.442695, %v355_v38  ;;  %v348_v45 = vmin.f32 %v340_v39, 20.0  ;;  %v311_v46 = vadd.f32 %v836_v25, %v310_v41  ;;  %v312_v47 = vpop.f32.mrb[5].mxu1  ;;  %v174_v50 = vpop.f32.mrb[4].mxu0 }
 0x110   :  { %v875_v52 = vadd.f32 %v842_v29, %v174_v50  ;;  %v176_v53 = vpop.f32.mrb[5].mxu0 }
 0x111   :  { %539 = vpow2.f32 %v363_v44  ;;  %v356_v48 = vmul.f32 0.5, %v348_v45  ;;  %v341_v49 = vmax.f32 %v311_v46, -30.0  ;;  %430 = vst.msk [vmem:[%s1008_s8 + $0x10] sm:$0xff] %vm411_vm1, %v311_v46 }
 0x112   :  { %v315_v51 = vpop.f32.mrb[6].mxu1  ;;  %422 = vst.msk [vmem:[%s1009_s7 + $0x10] sm:$0xff] %vm411_vm1, %v875_v52 }
 0x113   :  { %v365_v54 = vmul.f32 1.442695, %v356_v48  ;;  %v349_v55 = vmin.f32 %v341_v49, 20.0  ;;  %v316_v56 = vadd.f32 %v836_v25, %v315_v51  ;;  %v317_v57 = vpop.f32.mrb[7].mxu1  ;;  %v179_v60 = vpop.f32.mrb[6].mxu0 }
 0x114   :  { %v888_v62 = vadd.f32 %v842_v29, %v179_v60  ;;  %v181_v63 = vpop.f32.mrb[7].mxu0 }
 0x115   :  { %541 = vpow2.f32 %v365_v54  ;;  %v357_v58 = vmul.f32 0.5, %v349_v55  ;;  %v342_v59 = vmax.f32 %v316_v56, -30.0  ;;  %431 = vst.msk [vmem:[%s1008_s8 + $0x18] sm:$0xff] %vm411_vm1, %v316_v56  ;;  %v383_v63 = vld [vmem:[%s1010_s5 + $0x20] sm:$0xff] }
 0x116   :  { %v320_v61 = vpop.f32.mrb[8].mxu1  ;;  %423 = vst.msk [vmem:[%s1009_s7 + $0x18] sm:$0xff] %vm411_vm1, %v888_v62 }
 0x117   :  { %v367_v1 = vmul.f32 1.442695, %v357_v58  ;;  %v350_v2 = vmin.f32 %v342_v59, 20.0  ;;  %v321_v3 = vadd.f32 %v836_v25, %v320_v61  ;;  %v322_v4 = vpop.f32.mrb[9].mxu1  ;;  %v184_v8 = vpop.f32.mrb[8].mxu0 }
 0x118   :  { %v904_v10 = vadd.f32 %v842_v29, %v184_v8  ;;  %v186_v11 = vpop.f32.mrb[9].mxu0  ;;  %v384_v4 = vld [vmem:[%s1010_s5 + $0x28] sm:$0xff] }
 0x119   :  { %543 = vpow2.f32 %v367_v1  ;;  %v358_v5 = vmul.f32 0.5, %v350_v2  ;;  %v343_v6 = vmax.f32 %v321_v3, -30.0  ;;  %432 = vst.msk [vmem:[%s1008_s8 + $0x20] sm:$0xff] %vm411_vm1, %v321_v3 }
 0x11a   :  { %v325_v9 = vpop.f32.mrb[10].mxu1  ;;  %424 = vst.msk [vmem:[%s1009_s7 + $0x20] sm:$0xff] %vm411_vm1, %v904_v10 }
 0x11b   :  { %v540_v12 = vpop.eup %539  ;;  %v369_v13 = vmul.f32 1.442695, %v358_v5  ;;  %v351_v14 = vmin.f32 %v343_v6, 20.0  ;;  %v326_v0 = vadd.f32 %v836_v25, %v325_v9  ;;  %v327_v15 = vpop.f32.mrb[11].mxu1 }
 0x11c   :  { %v387_v16 = vmul.f32 %v540_v12, %v379_v7  ;;  %v189_v20 = vpop.f32.mrb[10].mxu0 }
 0x11d   :  { %545 = vpow2.f32 %v369_v13  ;;  %v359_v17 = vmul.f32 0.5, %v351_v14  ;;  %v344_v18 = vmax.f32 %v326_v0, -30.0  ;;  %433 = vst.msk [vmem:[%s1008_s8 + $0x28] sm:$0xff] %vm411_vm1, %v326_v0  ;;  %v921_v23 = vadd.f32 %v842_v29, %v189_v20  ;;  %v191_v24 = vpop.f32.mrb[11].mxu0 }
 0x11e   :  { %v395_v21 = vadd.f32 %v387_v16, %v849_v33  ;;  %v330_v22 = vpop.f32.mrb[12].mxu1 }
 0x11f   :  { %v542_v26 = vpop.eup %541  ;;  %v371_v27 = vmul.f32 1.442695, %v359_v17  ;;  %v352_v28 = vmin.f32 %v344_v18, 20.0  ;;  %v331_v30 = vadd.f32 %v836_v25, %v330_v22  ;;  %v332_v31 = vpop.f32.mrb[13].mxu1  ;;  %425 = vst.msk [vmem:[%s1009_s7 + $0x28] sm:$0xff] %vm411_vm1, %v921_v23 }
 0x120   :  { %v403_v32 = vmul.f32 0.18215, %v395_v21  ;;  %v388_v34 = vmul.f32 %v542_v26, %v380_v19  ;;  %v194_v37 = vpop.f32.mrb[12].mxu0 }
 0x121   :  { %547 = vpow2.f32 %v371_v27  ;;  %v360_v33 = vmul.f32 0.5, %v352_v28  ;;  %v345_v35 = vmax.f32 %v331_v30, -30.0  ;;  %434 = vst.msk [vmem:[%s1008_s8 + $0x30] sm:$0xff] %vm411_vm1, %v331_v30  ;;  %v195_v40 = vadd.f32 %v842_v29, %v194_v37  ;;  %v196_v41 = vpop.f32.mrb[13].mxu0 }
 0x122   :  { %412 = vst.msk [vmem:[%s1011_s6] sm:$0xff] %vm411_vm1, %v403_v32  ;;  %v396_v38 = vadd.f32 %v388_v34, %v862_v42  ;;  %v335_v39 = vpop.f32.mrb[14].mxu1 }
 0x123   :  { %v544_v43 = vpop.eup %543  ;;  %v373_v44 = vmul.f32 1.442695, %v360_v33  ;;  %v353_v45 = vmin.f32 %v345_v35, 20.0  ;;  %v336_v46 = vadd.f32 %v836_v25, %v335_v39  ;;  %v337_v47 = vpop.f32.mrb[15].mxu1  ;;  %426 = vst.msk [vmem:[%s1009_s7 + $0x30] sm:$0xff] %vm411_vm1, %v195_v40  ;;  %v382_v25 = vld [vmem:[%s1010_s5 + $0x18] sm:$0xff] }
 0x124   :  { %v404_v48 = vmul.f32 0.18215, %v396_v38  ;;  %v389_v49 = vmul.f32 %v544_v43, %v381_v36  ;;  %v199_v51 = vpop.f32.mrb[14].mxu0 }
 0x125   :  { %549 = vpow2.f32 %v373_v44  ;;  %v361_v50 = vmul.f32 0.5, %v353_v45  ;;  %v346_v42 = vmax.f32 %v336_v46, -30.0  ;;  %435 = vst.msk [vmem:[%s1008_s8 + $0x38] sm:$0xff] %vm411_vm1, %v336_v46  ;;  %v200_v54 = vadd.f32 %v842_v29, %v199_v51  ;;  %v201_v55 = vpop.f32.mrb[15].mxu0 }
 0x126   :  { %413 = vst.msk [vmem:[%s1011_s6 + $0x8] sm:$0xff] %vm411_vm1, %v404_v48  ;;  %v397_v53 = vadd.f32 %v389_v49, %v875_v52 }
 0x127   :  { %v546_v56 = vpop.eup %545  ;;  %v375_v57 = vmul.f32 1.442695, %v361_v50  ;;  %v354_v58 = vmin.f32 %v346_v42, 20.0  ;;  %427 = vst.msk [vmem:[%s1009_s7 + $0x38] sm:$0xff] %vm411_vm1, %v200_v54 }
 0x128   :  { %v405_v59 = vmul.f32 0.18215, %v397_v53  ;;  %v390_v60 = vmul.f32 %v546_v56, %v382_v25 }
 0x129   :  { %551 = vpow2.f32 %v375_v57  ;;  %v362_v61 = vmul.f32 0.5, %v354_v58 }
 0x12a   :  { %414 = vst.msk [vmem:[%s1011_s6 + $0x10] sm:$0xff] %vm411_vm1, %v405_v59  ;;  %v398_v29 = vadd.f32 %v390_v60, %v888_v62  ;;  %v385_v62 = vld [vmem:[%s1010_s5 + $0x30] sm:$0xff] }
 0x12b   :  { %v548_v52 = vpop.eup %547  ;;  %v377_v1 = vmul.f32 1.442695, %v362_v61 }
 0x12c   :  { %v406_v2 = vmul.f32 0.18215, %v398_v29  ;;  %v391_v3 = vmul.f32 %v548_v52, %v383_v63 }
 0x12d   :  { %553 = vpow2.f32 %v377_v1 }
 0x12e   :  { %415 = vst.msk [vmem:[%s1011_s6 + $0x18] sm:$0xff] %vm411_vm1, %v406_v2  ;;  %v399_v5 = vadd.f32 %v391_v3, %v904_v10  ;;  %v386_v10 = vld [vmem:[%s1010_s5 + $0x38] sm:$0xff] }
 0x12f   :  { %v550_v6 = vpop.eup %549 }
 0x130   :  { %v407_v7 = vmul.f32 0.18215, %v399_v5  ;;  %v392_v8 = vmul.f32 %v550_v6, %v384_v4 }
 0x132   :  { %416 = vst.msk [vmem:[%s1011_s6 + $0x20] sm:$0xff] %vm411_vm1, %v407_v7  ;;  %v400_v9 = vadd.f32 %v392_v8, %v921_v23 }
 0x133   :  { %v552_v11 = vpop.eup %551 }
 0x134   :  { %v408_v12 = vmul.f32 0.18215, %v400_v9  ;;  %v393_v13 = vmul.f32 %v552_v11, %v385_v62 }
 0x136   :  { %417 = vst.msk [vmem:[%s1011_s6 + $0x28] sm:$0xff] %vm411_vm1, %v408_v12  ;;  %v401_v14 = vadd.f32 %v393_v13, %v195_v40 }
 0x137   :  { %v554_v0 = vpop.eup %553 }
 0x138   :  { %v409_v15 = vmul.f32 0.18215, %v401_v14  ;;  %v394_v16 = vmul.f32 %v554_v0, %v386_v10 }
 0x13a   :  { %418 = vst.msk [vmem:[%s1011_s6 + $0x30] sm:$0xff] %vm411_vm1, %v409_v15  ;;  %v402_v17 = vadd.f32 %v394_v16, %v200_v54 }
 0x13c   :  { %v410_v18 = vmul.f32 0.18215, %v402_v17 }
 0x13e   :  { %419 = vst.msk [vmem:[%s1011_s6 + $0x38] sm:$0xff] %vm411_vm1, %v410_v18 }

</bundles_post_ra>
